<compile_context>
chip_gen: v5e
topology: v5e:2x2
jax: 0.10.0
libtpu: 0.0.40
codegen_flags: <defaults>
</compile_context>

<pallas_src>
import functools

import jax
import jax.numpy as jnp
from jax.experimental import pallas as pl
from jax.experimental.pallas import tpu as pltpu


def _round_up(n, m):
    return ((n + m - 1) // m) * m


def _heads_kernel(x_ref, w_ref, bg_ref, bi_ref,
                  g_ref, i_ref, gm_ref, im_ref, *, G, I):
    """One row tile: single fused matmul over all four heads + epilogue.

    x_ref  : (TR, D)        f32  (cast to bf16 on the VPU before the MXU)
    w_ref  : (D, 2G+2I)     bf16 [Wg | Wi | Wgm | Wim]
    bg_ref : (1, G)         f32
    bi_ref : (1, I)         f32
    g_ref  : (TR, G)        f32   ground
    i_ref  : (TR, I)        f32   inter
    gm_ref : (TR, G)        bf16  sigmoid(ground mask logits)
    im_ref : (TR, I)        bf16  sigmoid(inter mask logits)
    """
    x = x_ref[...].astype(jnp.bfloat16)
    y = jnp.dot(x, w_ref[...], preferred_element_type=jnp.float32)
    # G and I are multiples of 128, so every slice below is lane-aligned and
    # every store is a full-width, unmasked 128-lane store.
    g_ref[...] = y[:, :G] + bg_ref[...]
    i_ref[...] = y[:, G:G + I] + bi_ref[...]
    gm_ref[...] = jax.nn.sigmoid(y[:, G + I:2 * G + I]).astype(gm_ref.dtype)
    im_ref[...] = jax.nn.sigmoid(y[:, 2 * G + I:]).astype(im_ref.dtype)


def _choose_row_tile(R, D, G, I, *, max_tile=2048, vmem_target=12 << 20):
    """Pick TR (multiple of 8) so double-buffered in/out tiles fit ~vmem_target."""
    # Per-row bytes, double-buffered: x f32 in + two f32 heads + two bf16 heads.
    row_bytes = 2 * (D * 4 + (G + I) * 4 + (G + I) * 2)
    tr = min(max_tile, max(8, vmem_target // row_bytes))
    tr = (tr // 8) * 8
    tr = min(tr, _round_up(R, 8))
    # v7x megacore: guarantee >= 2 grid steps whenever R allows it so the
    # "parallel" row axis actually feeds both TensorCores (no-op on v5e/v6e).
    if R > 8 and pl.cdiv(R, tr) < 2:
        tr = _round_up(pl.cdiv(R, 2), 8)
    return tr


def _run_heads(x, w, bg, bi, G, I):
    """x: (R, D) f32, w: (D, 2G+2I) bf16, bg: (1, G) f32, bi: (1, I) f32.

    Returns (ground f32, inter f32, ground_masks bf16, inter_masks bf16),
    each of shape (R, G) / (R, I).
    """
    R, D = x.shape
    Nout = 2 * (G + I)

    TR = _choose_row_tile(R, D, G, I)
    grid_r = pl.cdiv(R, TR)

    # VMEM budget from the actual tile footprint (inputs/outputs assumed
    # double-buffered by the pipeline) plus a small fixed compiler headroom.
    vmem_est = (
        2 * TR * D * 4            # x tile, f32, double-buffered
        + 2 * D * Nout * 2        # resident weight slab, bf16 (2 buffers)
        + 2 * 8 * (G + I) * 4     # biases padded to sublane tiles
        + 2 * TR * (G + I) * 4    # ground/inter out tiles, f32, double-buffered
        + 2 * TR * (G + I) * 2    # mask out tiles, bf16, double-buffered
    )
    vmem_limit = min(48 << 20, max(8 << 20, int(vmem_est) + (4 << 20)))

    cost = pl.CostEstimate(
        flops=2 * R * D * Nout,
        transcendentals=R * (G + I),               # sigmoid on the mask heads
        bytes_accessed=(R * D * 4 + D * Nout * 2 + (G + I) * 4
                        + R * (G + I) * 4 + R * (G + I) * 2),
    )

    grid_spec = pltpu.PrefetchScalarGridSpec(
        num_scalar_prefetch=0,
        grid=(grid_r,),
        in_specs=[
            pl.BlockSpec((TR, D), lambda i: (i, 0)),     # x row tile
            pl.BlockSpec((D, Nout), lambda i: (0, 0)),   # fused weight slab
            pl.BlockSpec((1, G), lambda i: (0, 0)),      # ground bias
            pl.BlockSpec((1, I), lambda i: (0, 0)),      # inter bias
        ],
        out_specs=[
            pl.BlockSpec((TR, G), lambda i: (i, 0)),     # ground
            pl.BlockSpec((TR, I), lambda i: (i, 0)),     # inter
            pl.BlockSpec((TR, G), lambda i: (i, 0)),     # ground_masks
            pl.BlockSpec((TR, I), lambda i: (i, 0)),     # inter_masks
        ],
    )

    return pl.pallas_call(
        functools.partial(_heads_kernel, G=G, I=I),
        out_shape=(
            jax.ShapeDtypeStruct((R, G), jnp.float32),
            jax.ShapeDtypeStruct((R, I), jnp.float32),
            jax.ShapeDtypeStruct((R, G), jnp.bfloat16),
            jax.ShapeDtypeStruct((R, I), jnp.bfloat16),
        ),
        grid_spec=grid_spec,
        compiler_params=pltpu.CompilerParams(
            dimension_semantics=("parallel",),           # rows split across TCs
            vmem_limit_bytes=int(vmem_limit)),
        cost_estimate=cost,
    )(x, w, bg, bi)


class ModelsPallas:
    """JAX/Pallas analogue of the torch `Models` ensemble wrapper."""

    output_keys = ["ground", "ground_masks", "inter", "inter_masks"]

    def __init__(self, num_models, feat_dim, ground_dim, inter_dim, seed=0):
        self.ground_dim = ground_dim
        self.inter_dim = inter_dim
        self.num_models = num_models
        k = jax.random.PRNGKey(seed)
        ks = jax.random.split(k, 6)
        s = 1.0 / jnp.sqrt(feat_dim)
        self.wg = jax.random.normal(ks[0], (num_models, feat_dim, ground_dim),
                                    jnp.float32) * s
        self.bg = jax.random.normal(ks[1], (num_models, 1, ground_dim),
                                    jnp.float32) * 0.01
        self.wi = jax.random.normal(ks[2], (num_models, feat_dim, inter_dim),
                                    jnp.float32) * s
        self.bi = jax.random.normal(ks[3], (num_models, 1, inter_dim),
                                    jnp.float32) * 0.01
        self.wgm = jax.random.normal(ks[4], (num_models, feat_dim, ground_dim),
                                     jnp.float32) * s
        self.wim = jax.random.normal(ks[5], (num_models, feat_dim, inter_dim),
                                     jnp.float32) * s

        # Pre-build the fused [Wg | Wi | Wgm | Wim] bf16 slab + f32 biases once
        # per fold (and once for the ensemble mean) so no per-call weight pass,
        # concat or cast happens in forward.
        self._slabs = {}
        for fold in range(-1, num_models):
            self._slabs[fold] = self._build_slab(fold)

    def _build_slab(self, fold):
        if fold == -1:
            # Linear heads -> ensemble mean over models == mean of the weights.
            # (Only exact because the synthesized heads are linear.)
            wg = jnp.mean(self.wg, axis=0)
            bg = jnp.mean(self.bg, axis=0)
            wi = jnp.mean(self.wi, axis=0)
            bi = jnp.mean(self.bi, axis=0)
            wgm, wim = self.wgm[0], self.wim[0]          # masks from fold 0
        else:
            wg, bg = self.wg[fold], self.bg[fold]
            wi, bi = self.wi[fold], self.bi[fold]
            wgm, wim = self.wgm[fold], self.wim[fold]
        w = jnp.concatenate([wg, wi, wgm, wim], axis=-1).astype(jnp.bfloat16)
        return (jax.device_put(w),
                jax.device_put(bg.astype(jnp.float32)),
                jax.device_put(bi.astype(jnp.float32)))

    def __call__(self, inputs, fold=-1):
        B, T, D = inputs.shape
        G, I = self.ground_dim, self.inter_dim
        x = inputs.reshape(B * T, D).astype(jnp.float32)

        w, bg, bi = self._slabs[fold]
        ground, inter, gmask, imask = _run_heads(x, w, bg, bi, G, I)

        return {
            "ground": ground.reshape(B, T, G),
            "inter": inter.reshape(B, T, I),
            "ground_masks": gmask.reshape(B, T, G),
            "inter_masks": imask.reshape(B, T, I),
        }


def _reference(model, inputs, fold=-1):
    """Pure-JAX fp32 reference of the original torch semantics."""
    B, T, D = inputs.shape
    x = inputs.reshape(B * T, D).astype(jnp.float32)
    if fold == -1:
        grounds = jnp.einsum("rd,mdg->mrg", x, model.wg) + model.bg
        inters = jnp.einsum("rd,mdg->mrg", x, model.wi) + model.bi
        out = {
            "ground": jnp.mean(grounds, axis=0),
            "inter": jnp.mean(inters, axis=0),
            "ground_masks": jax.nn.sigmoid(x @ model.wgm[0]),
            "inter_masks": jax.nn.sigmoid(x @ model.wim[0]),
        }
    else:
        out = {
            "ground": x @ model.wg[fold] + model.bg[fold],
            "inter": x @ model.wi[fold] + model.bi[fold],
            "ground_masks": jax.nn.sigmoid(x @ model.wgm[fold]),
            "inter_masks": jax.nn.sigmoid(x @ model.wim[fold]),
        }
    return {k: v.reshape(B, T, -1) for k, v in out.items()}


if __name__ == "__main__":
    B, T, D = 2, 16, 128          # batch, seq, features
    G, I = 128, 128               # 'ground' / 'inter' output widths
    M = 3                         # number of fold models in the ensemble

    key = jax.random.PRNGKey(0)
    inputs = jax.random.normal(key, (B, T, D), jnp.float32)

    models = ModelsPallas(num_models=M, feat_dim=D, ground_dim=G,
                          inter_dim=I, seed=0)

    # Ensemble path (fold == -1).
    out = models(inputs, fold=-1)
    jax.block_until_ready(out)
    ref = _reference(models, inputs, fold=-1)
    for k in models.output_keys:
        assert out[k].shape == ref[k].shape, k
        # bf16 weights/acts on the MXU (fp32 accumulation), bf16 mask outputs
        # -> looser tolerance.
        assert jnp.allclose(out[k].astype(jnp.float32), ref[k],
                            atol=3e-2, rtol=3e-2), k

    # Single-fold path (fold >= 0).
    out_f1 = models(inputs, fold=1)
    jax.block_until_ready(out_f1)
    ref_f1 = _reference(models, inputs, fold=1)
    for k in models.output_keys:
        assert out_f1[k].shape == ref_f1[k].shape, k
        assert jnp.allclose(out_f1[k].astype(jnp.float32), ref_f1[k],
                            atol=3e-2, rtol=3e-2), k

    print("KERNEL_OK")
</pallas_src>

<mosaic_0001>
module attributes {stable_mosaic.version = 11 : i64} {
  func.func @_heads_kernel(%arg0: i32, %arg1: memref<16x128xf32, #tpu.memory_space<vmem>>, %arg2: memref<128x512xbf16, #tpu.memory_space<vmem>>, %arg3: memref<1x128xf32, #tpu.memory_space<vmem>>, %arg4: memref<1x128xf32, #tpu.memory_space<vmem>>, %arg5: memref<16x128xf32, #tpu.memory_space<vmem>>, %arg6: memref<16x128xf32, #tpu.memory_space<vmem>>, %arg7: memref<16x128xbf16, #tpu.memory_space<vmem>>, %arg8: memref<16x128xbf16, #tpu.memory_space<vmem>>) attributes {dimension_semantics = [#tpu.dimension_semantics<parallel>], iteration_bounds = array<i64: 2>, scalar_prefetch = 0 : i64, scratch_operands = 0 : i64, tpu.core_type = #tpu.core_type<tc>, window_params = [{transform_indices = @transform_0, window_bounds = array<i64: 16, 128>}, {pipeline_mode = #tpu.pipeline_mode<synchronous>, transform_indices = @transform_1, window_bounds = array<i64: 128, 512>}, {pipeline_mode = #tpu.pipeline_mode<synchronous>, transform_indices = @transform_2, window_bounds = array<i64: 1, 128>}, {pipeline_mode = #tpu.pipeline_mode<synchronous>, transform_indices = @transform_3, window_bounds = array<i64: 1, 128>}, {transform_indices = @transform_4, window_bounds = array<i64: 16, 128>}, {transform_indices = @transform_5, window_bounds = array<i64: 16, 128>}, {transform_indices = @transform_6, window_bounds = array<i64: 16, 128>}, {transform_indices = @transform_7, window_bounds = array<i64: 16, 128>}]} {
    %c0 = arith.constant 0 : index
    %c0_0 = arith.constant 0 : index
    %0 = vector.load %arg1[%c0, %c0_0] : memref<16x128xf32, #tpu.memory_space<vmem>>, vector<16x128xf32>
    %1 = arith.truncf %0 : vector<16x128xf32> to vector<16x128xbf16>
    %c0_1 = arith.constant 0 : index
    %c0_2 = arith.constant 0 : index
    %2 = vector.load %arg2[%c0_1, %c0_2] : memref<128x512xbf16, #tpu.memory_space<vmem>>, vector<128x512xbf16>
    %cst = arith.constant dense<0.000000e+00> : vector<16x512xf32>
    %3 = tpu.matmul %1, %2, %cst {dimension_numbers = #tpu.dot_dimension_numbers<[1], [0], [0], [1], [0, 0, 1, 1], [], []>} : vector<16x128xbf16>, vector<128x512xbf16>, vector<16x512xf32> -> vector<16x512xf32>
    %4 = vector.extract_strided_slice %3 {offsets = [0, 0], sizes = [16, 128], strides = [1, 1]} : vector<16x512xf32> to vector<16x128xf32>
    %c0_3 = arith.constant 0 : index
    %c0_4 = arith.constant 0 : index
    %5 = vector.load %arg3[%c0_3, %c0_4] : memref<1x128xf32, #tpu.memory_space<vmem>>, vector<1x128xf32>
    %6 = vector.broadcast %5 : vector<1x128xf32> to vector<16x128xf32>
    %7 = arith.addf %4, %6 : vector<16x128xf32>
    %c0_5 = arith.constant 0 : index
    %c0_6 = arith.constant 0 : index
    %8 = vector.load %arg5[%c0_5, %c0_6] : memref<16x128xf32, #tpu.memory_space<vmem>>, vector<16x128xf32>
    tpu.vector_store %arg5[%c0_5, %c0_6], %7 {strides = array<i32>} : memref<16x128xf32, #tpu.memory_space<vmem>>, vector<16x128xf32>,
    %9 = vector.extract_strided_slice %3 {offsets = [0, 128], sizes = [16, 128], strides = [1, 1]} : vector<16x512xf32> to vector<16x128xf32>
    %c0_7 = arith.constant 0 : index
    %c0_8 = arith.constant 0 : index
    %10 = vector.load %arg4[%c0_7, %c0_8] : memref<1x128xf32, #tpu.memory_space<vmem>>, vector<1x128xf32>
    %11 = vector.broadcast %10 : vector<1x128xf32> to vector<16x128xf32>
    %12 = arith.addf %9, %11 : vector<16x128xf32>
    %c0_9 = arith.constant 0 : index
    %c0_10 = arith.constant 0 : index
    %13 = vector.load %arg6[%c0_9, %c0_10] : memref<16x128xf32, #tpu.memory_space<vmem>>, vector<16x128xf32>
    tpu.vector_store %arg6[%c0_9, %c0_10], %12 {strides = array<i32>} : memref<16x128xf32, #tpu.memory_space<vmem>>, vector<16x128xf32>,
    %14 = vector.extract_strided_slice %3 {offsets = [0, 256], sizes = [16, 128], strides = [1, 1]} : vector<16x512xf32> to vector<16x128xf32>
    %15 = arith.negf %14 : vector<16x128xf32>
    %16 = math.exp %15 : vector<16x128xf32>
    %cst_11 = arith.constant 1.000000e+00 : f32
    %17 = vector.broadcast %cst_11 : f32 to vector<16x128xf32>
    %18 = arith.addf %17, %16 : vector<16x128xf32>
    %19 = arith.divf %17, %18 : vector<16x128xf32>
    %20 = arith.truncf %19 : vector<16x128xf32> to vector<16x128xbf16>
    %c0_12 = arith.constant 0 : index
    %c0_13 = arith.constant 0 : index
    %21 = vector.load %arg7[%c0_12, %c0_13] : memref<16x128xbf16, #tpu.memory_space<vmem>>, vector<16x128xbf16>
    tpu.vector_store %arg7[%c0_12, %c0_13], %20 {strides = array<i32>} : memref<16x128xbf16, #tpu.memory_space<vmem>>, vector<16x128xbf16>,
    %22 = vector.extract_strided_slice %3 {offsets = [0, 384], sizes = [16, 128], strides = [1, 1]} : vector<16x512xf32> to vector<16x128xf32>
    %23 = arith.negf %22 : vector<16x128xf32>
    %24 = math.exp %23 : vector<16x128xf32>
    %cst_14 = arith.constant 1.000000e+00 : f32
    %25 = vector.broadcast %cst_14 : f32 to vector<16x128xf32>
    %26 = arith.addf %25, %24 : vector<16x128xf32>
    %27 = arith.divf %25, %26 : vector<16x128xf32>
    %28 = arith.truncf %27 : vector<16x128xf32> to vector<16x128xbf16>
    %c0_15 = arith.constant 0 : index
    %c0_16 = arith.constant 0 : index
    %29 = vector.load %arg8[%c0_15, %c0_16] : memref<16x128xbf16, #tpu.memory_space<vmem>>, vector<16x128xbf16>
    tpu.vector_store %arg8[%c0_15, %c0_16], %28 {strides = array<i32>} : memref<16x128xbf16, #tpu.memory_space<vmem>>, vector<16x128xbf16>,
    return
  }
  func.func @transform_0(%arg0: i32) -> (i32, i32) {
    %c0_i32 = arith.constant 0 : i32
    %c0_i32_0 = arith.constant 0 : i32
    return %arg0, %c0_i32 : i32, i32
  }
  func.func @transform_1(%arg0: i32) -> (i32, i32) {
    %c0_i32 = arith.constant 0 : i32
    %c0_i32_0 = arith.constant 0 : i32
    %c0_i32_1 = arith.constant 0 : i32
    return %c0_i32, %c0_i32_0 : i32, i32
  }
  func.func @transform_2(%arg0: i32) -> (i32, i32) {
    %c0_i32 = arith.constant 0 : i32
    %c0_i32_0 = arith.constant 0 : i32
    %c0_i32_1 = arith.constant 0 : i32
    return %c0_i32, %c0_i32_0 : i32, i32
  }
  func.func @transform_3(%arg0: i32) -> (i32, i32) {
    %c0_i32 = arith.constant 0 : i32
    %c0_i32_0 = arith.constant 0 : i32
    %c0_i32_1 = arith.constant 0 : i32
    return %c0_i32, %c0_i32_0 : i32, i32
  }
  func.func @transform_4(%arg0: i32) -> (i32, i32) {
    %c0_i32 = arith.constant 0 : i32
    %c0_i32_0 = arith.constant 0 : i32
    return %arg0, %c0_i32 : i32, i32
  }
  func.func @transform_5(%arg0: i32) -> (i32, i32) {
    %c0_i32 = arith.constant 0 : i32
    %c0_i32_0 = arith.constant 0 : i32
    return %arg0, %c0_i32 : i32, i32
  }
  func.func @transform_6(%arg0: i32) -> (i32, i32) {
    %c0_i32 = arith.constant 0 : i32
    %c0_i32_0 = arith.constant 0 : i32
    return %arg0, %c0_i32 : i32, i32
  }
  func.func @transform_7(%arg0: i32) -> (i32, i32) {
    %c0_i32 = arith.constant 0 : i32
    %c0_i32_0 = arith.constant 0 : i32
    return %arg0, %c0_i32 : i32, i32
  }
}

</mosaic_0001>

<bundles_post_ra>
// kernel: tpu_custom_call.1
= control target key start
LH: loop header
LB: loop body
LE: loop exit
PB: predicated region body
PF: predicated region fallthrough
CT: control target
= control target key end

     0   :  { %s1855_s0 = inlined_call_operand.hbm [shape: f32[32,128], index: 0, kind: input, shape index: {}]   ;;  %s1856_s1 = inlined_call_operand.hbm [shape: bf16[128,512], index: 1, kind: input, shape index: {}]   ;;  %s1857_s2 = inlined_call_operand.vmem [shape: f32[1,128], index: 2, kind: input, shape index: {}]   ;;  %s1858_s3 = inlined_call_operand.vmem [shape: f32[1,128], index: 3, kind: input, shape index: {}]   ;;  %s1859_s4 = inlined_call_operand.hbm [shape: f32[32,128], index: 4, kind: output, shape index: {0}]   ;;  %s1860_s5 = inlined_call_operand.hbm [shape: f32[32,128], index: 5, kind: output, shape index: {1}]   ;;  %s1861_s6 = inlined_call_operand.hbm [shape: bf16[32,128], index: 6, kind: output, shape index: {2}]   ;;  %s1862_s7 = inlined_call_operand.hbm [shape: bf16[32,128], index: 7, kind: output, shape index: {3}]  }
   0x1   :  { %1864 = sst [smem:[#allocation18_spill]] %s1855_s0 }
   0x2   :  { %1865 = sst [smem:[#allocation19_spill]] %s1856_s1 }
   0x3   :  { %13 = vsyncpa [#allocation3], 0 }
   0x4   :  { %15 = vsyncpa [#allocation3 + $0x1], 0 }
   0x5   :  { %16 = vsyncpa [#allocation6], 0 }
   0x6   :  { %17 = vsyncpa [#allocation4], 0 }
   0x7   :  { %19 = vsyncpa [#allocation4 + $0x1], 0 }
   0x8   :  { %20 = vsyncpa [#allocation9], 0 }
   0x9   :  { %22 = vsyncpa [#allocation9 + $0x1], 0 }
   0xa   :  { %23 = vsyncpa [#allocation12], 0 }
   0xb   :  { %25 = vsyncpa [#allocation12 + $0x1], 0  ;;  %s1539_s24 = smov 0   ;;  %s1541_s25 = smov 0  }
   0xc   :  { %s1543_s26 = smov 0   ;;  %s1545_s27 = smov 0  }
   0xd LB: > { %s1560_s28 = sadd.s32 4294967295, %s1488_s27   ;;  %s1863_s29 = sadd.s32 4294967294, %s1488_s27   ;;  %s1488_s27 = sphi %s1545_s27, %s1882_s27   ;;  %s1484_s26 = sphi %s1543_s26, %s1881_s26   ;;  %s1480_s25 = sphi %s1541_s25, %s1880_s25   ;;  %s1476_s24 = sphi %s1539_s24, %s1879_s24  }
   0xe   : > { %p51_p0 = scmp.ne.s32.totalorder %s1480_s25, %s1476_s24  ;;  %p52_p1 = scmp.eq.s32.totalorder %s1560_s28, 0 }
   0xf   : > { %p138_p2 = scmp.eq.s32.totalorder %s1560_s28, 1  ;;  %p144_p3 = scmp.eq.s32.totalorder %s1863_s29, 1 }
  0x10   : > { %p1571_p4 = por %p52_p1, %p51_p0  ;;  %p962_p5 = scmp.ge.s32.totalorder %s1488_s27, 1 }
  0x11   : > { %p1576_p6 = por %p144_p3, %p51_p0  ;;  %p229_p7 = scmp.lt.s32.totalorder %s1488_s27, 3 }
  0x12   : > { %s1868_s1 = sld [smem:[#allocation19_spill]]  ;;  %s1490_s13 = smov [#allocation5]  }
  0x13   : > { %p1584_p8 = pnand %p962_p5, %p229_p7  ;;  %s242_s14 = sshll.u32 %s1490_s13, 4  ;;  %s243_s14 = int_to_ptr.vmem [resolvable:$true] %s242_s14 }
  0x14   : > { %s1594_s15 = sadd.s32 1, %s1488_s27   ;;  %s1491_s16 = smov 256  }
  0x15   : > { %p1182_p9 = pneg %p1584_p8  ;;  %s1492_s17 = smov 16  }
  0x16   : > { %s35_s18 = ssub.s32 %s1488_s27, %s1594_s15  ;;  %s38_s19 = sadd.s32 1, %s1484_s26 }
  0x17   : > { %p1183_p10 = pnand %p1182_p9, %p52_p1  ;;  %p36_p12 = scmp.eq.s32.totalorder %s35_s18, 0 }
  0x18   : > { %s240_s11 = sshll.u32 %s1868_s1, 4  ;;  %p45_p13 = scmp.ne.s32.totalorder %s1484_s26, %s1480_s25  ;;  %s241_s11 = int_to_ptr.hbm [resolvable:$true] %s240_s11 }
  0x19   : > { %1185 = dma.hbm_to_vmem [thread:$0]  (!%p1183_p10), %s241_s11, 4096, %s243_s14, [#allocation6], %s1491_s16, %s1491_s16, %s1492_s17  }
  0x1a   : > { %p46_p0 = scmp.eq.s32.totalorder %s1488_s27, 0  ;;  %p1204_p3 = scmp.lt.s32.totalorder %s1488_s27, 2 }
  0x1b   : > { %s1604_s20 = scalar_select %p36_p12, %s1484_s26, %s38_s19  }
  0x1c   : > { %p47_p5 = por %p46_p0, %p45_p13  ;;  %p1608_p7 = por %p138_p2, %p45_p13 }
  0x1d   : > { %s262_s22 = sand.u32 1, %s1484_s26   ;;  %s1121_s23 = sshll.u32 %s1488_s27, 4 }
  0x1e   : > { %s965_s9 = sshll.u32 %s262_s22, 4  ;;  %s1871_s0 = sld [smem:[#allocation18_spill]] }
  0x1f   : > { %s266_s16 = scalar_lea.vmem [#allocation2], %s965_s9  ;;  %p1619_p9 = pnand %p1204_p3, %p47_p5 }
  0x20   : > { %s274_s17 = sshll.u32 %s266_s16, 4  ;;  %s263_s19 = scalar_lea.sflag [#allocation3], %s262_s22  ;;  %s275_s17 = int_to_ptr.vmem [resolvable:$true] %s274_s17 }
  0x21   : > { %p1300_p10 = pneg %p1619_p9 }
  0x24   : > { %s271_s13 = scalar_lea.hbm %s1871_s0, %s1121_s23  ;;  %s1303_s10 = scalar_lea.hbm %s1871_s0, 32 }
  0x25   : > { %s272_s14 = sshll.u32 %s271_s13, 4  ;;  %s273_s14 = int_to_ptr.hbm [resolvable:$true] %s272_s14 }
  0x26   : > { %s1296_s29 = sshra.s32 %s273_s14, 4  ;;  %s1297_s29 = int_to_ptr.hbm [resolvable:$true] %s1296_s29 }
  0x27   : > { %s1298_s1 = scalar_lea.hbm %s1297_s29, 16  ;;  %p1304_p0 = scmp.lt.s32.totalorder %s1297_s29, %s1871_s0 }
  0x28   : > { %p1299_p2 = scmp.ne.s32.totalorder %s1297_s29, %s1298_s1  ;;  %p1305_p3 = scmp.lt.s32.totalorder %s1303_s10, %s1298_s1 }
  0x2a   : > { %p1301_p12 = pnand %p1300_p10, %p1299_p2  ;;  %p1306_p5 = por %p1305_p3, %p1304_p0 }
  0x2c   : > { %p1302_p13 = pneg %p1301_p12 }
  0x2e   : > { %p1307_p11 = pnand %p1306_p5, %p1302_p13 }
  0x30   : > { %1310 = shalt.err (!%p1307_p11)
}
  0x31   : > { %s1493_s22 = smov 128   ;;  %s1494_s16 = smov 8  }
  0x32   : > { %1189 = dma.hbm_to_vmem [thread:$0]  (!%p1619_p9), %s273_s14, 256, %s275_s17, %s263_s19, %s1493_s22, %s1493_s22, %s1494_s16  }
  0x33   : > { %286 = sbr.rel (%p1584_p8) target bundleno = 292 (0x124), region = 36  ;;  %s1636_s23 = sand.u32 (!%p1584_p8), 1, %s1480_s25  }
  0x34   : > { %s1639_s9 = sshll.u32 (!%p1584_p8), %s1636_s23, 4  ;;  %s289_s1 = scalar_lea.sflag (!%p1584_p8), [#allocation3], %s1636_s23 }
  0x35   : > { %s292_s29 = scalar_lea.vmem (!%p1584_p8), [#allocation2], %s1639_s9 }
  0x38   : > { %1455 = dma.done.wait (%p1571_p4), %s289_s1, 256  }
  0x39   : > { %1457 = vsyncadd (%p1571_p4), %s289_s1, 4294967040 }
  0x3a   : > { %1459 = dma.done.wait (%p52_p1), [#allocation6], 4096  }
  0x3b   : > { %1461 = vsyncadd (%p52_p1), [#allocation6], 4294963200  ;;  %v1097_v0 = vld [vmem:[#allocation5 + $0xe8] sm:$0xf]  ;;  %v1153_v1 = vld [vmem:[#allocation5 + $0xf4] sm:$0xf0] }
  0x3c   : > { %v1151_v2 = vld [vmem:[#allocation5 + $0xec] sm:$0xf]  ;;  %v1098_v3 = vor.u32 %v1153_v1, %v1097_v0  ;;  %v1099_v4 = vld [vmem:[#allocation5 + $0xf8] sm:$0xf0]  ;;  %v1081_v5 = vld [vmem:[#allocation5 + $0xc8] sm:$0xf] }
  0x3d   : > { %v1149_v6 = vld [vmem:[#allocation5 + $0xd4] sm:$0xf0]  ;;  %v1102_v7 = vor.u32 %v1151_v2, %v1099_v4  ;;  %v1147_v8 = vld [vmem:[#allocation5 + $0xcc] sm:$0xf]  ;;  %v1083_v9 = vld [vmem:[#allocation5 + $0xd8] sm:$0xf0] }
  0x3e   : > { %572 = vmatpush.bf16.msra.mxu2 %v1098_v3  ;;  %v1082_v10 = vor.u32 %v1149_v6, %v1081_v5  ;;  %v1086_v11 = vor.u32 %v1147_v8, %v1083_v9  ;;  %v1065_v12 = vld [vmem:[#allocation5 + $0xa8] sm:$0xf]  ;;  %v1145_v13 = vld [vmem:[#allocation5 + $0xb4] sm:$0xf0]  ;;  %v1143_v14 = vld [vmem:[#allocation5 + $0xac] sm:$0xf] }
  0x3f   : > { %586 = vmatpush.bf16.msra.mxu3 %v1102_v7  ;;  %v1067_v15 = vld [vmem:[#allocation5 + $0xb8] sm:$0xf0]  ;;  %v1066_v16 = vor.u32 %v1145_v13, %v1065_v12  ;;  %v1049_v18 = vld [vmem:[#allocation5 + $0x88] sm:$0xf]  ;;  %v1141_v19 = vld [vmem:[#allocation5 + $0x94] sm:$0xf0] }
  0x40   : > { %v1070_v17 = vor.u32 %v1143_v14, %v1067_v15  ;;  %v1139_v20 = vld [vmem:[#allocation5 + $0x8c] sm:$0xf]  ;;  %v1051_v21 = vld [vmem:[#allocation5 + $0x98] sm:$0xf0]  ;;  %v1150_v22 = vld [vmem:[#allocation5 + $0xe4] sm:$0xf]  ;;  %v1050_v27 = vor.u32 %v1141_v19, %v1049_v18 }
  0x41   : > { %v1091_v23 = vld [vmem:[#allocation5 + $0xf0] sm:$0xf0]  ;;  %v1089_v25 = vld [vmem:[#allocation5 + $0xe0] sm:$0xf]  ;;  %v1152_v26 = vld [vmem:[#allocation5 + $0xec] sm:$0xf0]  ;;  %v1054_v31 = vor.u32 %v1139_v20, %v1051_v21 }
  0x42   : > { %573 = vmatpush.bf16.msra.mxu2 %v1082_v10  ;;  %v1094_v24 = vor.u32 %v1150_v22, %v1091_v23  ;;  %v1033_v28 = vld [vmem:[#allocation5 + $0x68] sm:$0xf]  ;;  %v1137_v29 = vld [vmem:[#allocation5 + $0x74] sm:$0xf0]  ;;  %v1090_v30 = vor.u32 %v1152_v26, %v1089_v25  ;;  %v1146_v32 = vld [vmem:[#allocation5 + $0xc4] sm:$0xf] }
  0x43   : > { %587 = vmatpush.bf16.msra.mxu3 %v1086_v11  ;;  %v1075_v33 = vld [vmem:[#allocation5 + $0xd0] sm:$0xf0]  ;;  %v1073_v34 = vld [vmem:[#allocation5 + $0xc0] sm:$0xf]  ;;  %v1135_v35 = vld [vmem:[#allocation5 + $0x6c] sm:$0xf]  ;;  %v1034_v43 = vor.u32 %v1137_v29, %v1033_v28 }
  0x44   : > { %558 = vmatpush.bf16.msra.mxu1 %v1094_v24  ;;  %v1035_v36 = vld [vmem:[#allocation5 + $0x78] sm:$0xf0]  ;;  %544 = vmatpush.bf16.msra.mxu0 %v1090_v30  ;;  %v1078_v37 = vor.u32 %v1146_v32, %v1075_v33  ;;  %v1148_v38 = vld [vmem:[#allocation5 + $0xcc] sm:$0xf0]  ;;  %v1142_v40 = vld [vmem:[#allocation5 + $0xa4] sm:$0xf] }
  0x45   : > { %v1074_v39 = vor.u32 %v1148_v38, %v1073_v34  ;;  %v1059_v41 = vld [vmem:[#allocation5 + $0xb0] sm:$0xf0]  ;;  %v1057_v42 = vld [vmem:[#allocation5 + $0xa0] sm:$0xf]  ;;  %v1144_v44 = vld [vmem:[#allocation5 + $0xac] sm:$0xf0]  ;;  %v1038_v45 = vor.u32 %v1135_v35, %v1035_v36 }
  0x46   : > { %574 = vmatpush.bf16.msra.mxu2 %v1066_v16  ;;  %v1017_v46 = vld [vmem:[#allocation5 + $0x48] sm:$0xf]  ;;  %v1133_v47 = vld [vmem:[#allocation5 + $0x54] sm:$0xf0]  ;;  %v1131_v48 = vld [vmem:[#allocation5 + $0x4c] sm:$0xf]  ;;  %v1062_v49 = vor.u32 %v1142_v40, %v1059_v41  ;;  %v1058_v51 = vor.u32 %v1144_v44, %v1057_v42 }
  0x47   : > { %588 = vmatpush.bf16.msra.mxu3 %v1070_v17  ;;  %v1019_v50 = vld [vmem:[#allocation5 + $0x58] sm:$0xf0]  ;;  %v1138_v52 = vld [vmem:[#allocation5 + $0x84] sm:$0xf]  ;;  %v1043_v53 = vld [vmem:[#allocation5 + $0x90] sm:$0xf0]  ;;  %v1018_v56 = vor.u32 %v1133_v47, %v1017_v46 }
  0x48   : > { %559 = vmatpush.bf16.msra.mxu1 %v1078_v37  ;;  %545 = vmatpush.bf16.msra.mxu0 %v1074_v39  ;;  %v1041_v54 = vld [vmem:[#allocation5 + $0x80] sm:$0xf]  ;;  %v1140_v55 = vld [vmem:[#allocation5 + $0x8c] sm:$0xf0]  ;;  %v1001_v57 = vld [vmem:[#allocation5 + $0x28] sm:$0xf]  ;;  %v1022_v58 = vor.u32 %v1131_v48, %v1019_v50  ;;  %v1046_v62 = vor.u32 %v1138_v52, %v1043_v53 }
  0x49   : > { %v1129_v59 = vld [vmem:[#allocation5 + $0x34] sm:$0xf0]  ;;  %v1127_v60 = vld [vmem:[#allocation5 + $0x2c] sm:$0xf]  ;;  %v1003_v61 = vld [vmem:[#allocation5 + $0x38] sm:$0xf0]  ;;  %v1042_v63 = vor.u32 %v1140_v55, %v1041_v54 }
  0x4a   : > { %575 = vmatpush.bf16.msra.mxu2 %v1050_v27  ;;  %v1134_v0 = vld [vmem:[#allocation5 + $0x64] sm:$0xf]  ;;  %v1027_v1 = vld [vmem:[#allocation5 + $0x70] sm:$0xf0]  ;;  %v1025_v2 = vld [vmem:[#allocation5 + $0x60] sm:$0xf]  ;;  %v1002_v4 = vor.u32 %v1129_v59, %v1001_v57  ;;  %v1006_v5 = vor.u32 %v1127_v60, %v1003_v61 }
  0x4b   : > { %589 = vmatpush.bf16.msra.mxu3 %v1054_v31  ;;  %v1136_v3 = vld [vmem:[#allocation5 + $0x6c] sm:$0xf0]  ;;  %v985_v6 = vld [vmem:[#allocation5 + $0x8] sm:$0xf]  ;;  %v1125_v7 = vld [vmem:[#allocation5 + $0x14] sm:$0xf0]  ;;  %v1030_v9 = vor.u32 %v1134_v0, %v1027_v1 }
  0x4c   : > { %560 = vmatpush.bf16.msra.mxu1 %v1062_v49  ;;  %546 = vmatpush.bf16.msra.mxu0 %v1058_v51  ;;  %v1123_v8 = vld [vmem:[#allocation5 + $0xc] sm:$0xf]  ;;  %v987_v10 = vld [vmem:[#allocation5 + $0x18] sm:$0xf0]  ;;  %v1026_v11 = vor.u32 %v1136_v3, %v1025_v2  ;;  %v1130_v12 = vld [vmem:[#allocation5 + $0x44] sm:$0xf]  ;;  %v986_v16 = vor.u32 %v1125_v7, %v985_v6 }
  0x4d   : > { %v1011_v13 = vld [vmem:[#allocation5 + $0x50] sm:$0xf0]  ;;  %v1009_v14 = vld [vmem:[#allocation5 + $0x40] sm:$0xf]  ;;  %v1132_v15 = vld [vmem:[#allocation5 + $0x4c] sm:$0xf0]  ;;  %v990_v19 = vor.u32 %v1123_v8, %v987_v10 }
  0x4e   : > { %576 = vmatpush.bf16.msra.mxu2 %v1034_v43  ;;  %v349_v17 = vld [vmem:[%s292_s29] sm:$0xff]  ;;  %v350_v18 = vld [vmem:[%s292_s29 + $0x8] sm:$0xff]  ;;  %v1014_v20 = vor.u32 %v1130_v12, %v1011_v13  ;;  %v1010_v21 = vor.u32 %v1132_v15, %v1009_v14  ;;  %s1662_s18 = scalar_lea.vmem [#allocation8], %s1639_s9  ;;  %s1154_s19 = sshll.u32 %s1560_s28, 4 }
  0x4f   : > { %590 = vmatpush.bf16.msra.mxu3 %v1038_v45  ;;  %v1126_v22 = vld [vmem:[#allocation5 + $0x24] sm:$0xf]  ;;  %v995_v23 = vld [vmem:[#allocation5 + $0x30] sm:$0xf0]  ;;  %v351_v24 = vpack.c.bf16 %v350_v18, %v349_v17  ;;  %v993_v25 = vld [vmem:[#allocation5 + $0x20] sm:$0xf]  ;;  %s744_s16 = scalar_lea.hbm %s1860_s5, %s1154_s19  ;;  %s727_s30 = scalar_lea.hbm %s1859_s4, %s1154_s19 }
  0x50   : > { %561 = vmatpush.bf16.msra.mxu1 %v1046_v62  ;;  %547 = vmatpush.bf16.msra.mxu0 %v1042_v63  ;;  %v1128_v26 = vld [vmem:[#allocation5 + $0x2c] sm:$0xf0]  ;;  %v998_v27 = vor.u32 %v1126_v22, %v995_v23  ;;  %v1122_v29 = vld [vmem:[#allocation5 + $0x4] sm:$0xf]  ;;  %v979_v30 = vld [vmem:[#allocation5 + $0x10] sm:$0xf0] }
  0x51   : > { %v994_v28 = vor.u32 %v1128_v26, %v993_v25  ;;  %v977_v31 = vld [vmem:[#allocation5] sm:$0xf]  ;;  %v1124_v32 = vld [vmem:[#allocation5 + $0xc] sm:$0xf0]  ;;  %v982_v33 = vor.u32 %v1122_v29, %v979_v30  ;;  %s1667_s10 = scalar_lea.vmem [#allocation7], %s1639_s9  ;;  %s745_s11 = sshll.u32 %s1662_s18, 4  ;;  %s1684_s11 = int_to_ptr.vmem [resolvable:$true] %s745_s11 }
  0x52   : > { %577 = vmatpush.bf16.msra.mxu2 %v1018_v56  ;;  %v978_v34 = vor.u32 %v1124_v32, %v977_v31  ;;  %v1248_v36 = vld [vmem:[%s1858_s3] ss:$0 sm:$0xff]  ;;  %s728_s1 = sshll.u32 %s1667_s10, 4  ;;  %s705_s12 = sand.u32 1, %s1560_s28   ;;  %s1687_s1 = int_to_ptr.vmem [resolvable:$true] %s728_s1 }
  0x53   : > { %591 = vmatpush.bf16.msra.mxu3 %v1022_v58  ;;  %v1249_v39 = vld [vmem:[%s1857_s2] ss:$0 sm:$0xff]  ;;  %s747_s14 = sshll.u32 %s744_s16, 4  ;;  %s730_s17 = sshll.u32 %s727_s30, 4  ;;  %s748_s14 = int_to_ptr.hbm [resolvable:$true] %s747_s14  ;;  %s1690_s17 = int_to_ptr.hbm [resolvable:$true] %s730_s17 }
  0x54   : > { %562 = vmatpush.bf16.msra.mxu1 %v1030_v9  ;;  %548 = vmatpush.bf16.msra.mxu0 %v1026_v11  ;;  %s1697_s19 = scalar_lea.sflag [#allocation9], %s705_s12  ;;  %s1340_s13 = sshra.s32 %s748_s14, 4  ;;  %s1341_s13 = int_to_ptr.hbm [resolvable:$true] %s1340_s13 }
  0x55   : > { %s1342_s22 = scalar_lea.hbm %s1341_s13, 16  ;;  %p1347_p11 = scmp.lt.s32.totalorder %s1341_s13, %s1860_s5 }
  0x56   : > { %578 = vmatpush.bf16.msra.mxu2 %v1002_v4  ;;  %p1343_p1 = scmp.ne.s32.totalorder %s1341_s13, %s1342_s22 }
  0x57   : > { %592 = vmatpush.bf16.msra.mxu3 %v1006_v5 }
  0x58   : > { %563 = vmatpush.bf16.msra.mxu1 %v1014_v20  ;;  %549 = vmatpush.bf16.msra.mxu0 %v1010_v21  ;;  %p1344_p4 = pnand %p1343_p1, %p1608_p7 }
  0x5a   : > { %579 = vmatpush.bf16.msra.mxu2 %v986_v16  ;;  %p1345_p8 = pneg %p1344_p4 }
  0x5b   : > { %593 = vmatpush.bf16.msra.mxu3 %v990_v19 }
  0x5c   : > { %564 = vmatpush.bf16.msra.mxu1 %v998_v27  ;;  %550 = vmatpush.bf16.msra.mxu0 %v994_v28 }
  0x5d   : > { %580 = vmatmul.bf16.vlgmr.msra.gmra.mxu2 %v351_v24 }
  0x5e   : > { %594 = vmatmul.bf16.vlgmr.msra.gmra.mxu3 %v351_v24 }
  0x60   : > { %565 = vmatpush.bf16.msra.mxu1 %v982_v33  ;;  %551 = vmatpush.bf16.msra.mxu0 %v978_v34 }
  0x63   : > { %566 = vmatmul.bf16.vlgmr.msra.gmra.mxu1 %v351_v24  ;;  %552 = vmatmul.bf16.vlgmr.msra.gmra.mxu0 %v351_v24 }
  0xe0   : > { %v581_v35 = vpop.f32.mrf.mxu2  ;;  %v567_v41 = vpop.f32.mrf.mxu1 }
  0xe1   : > { %v1103_v37 = vmul.f32 -1.442695, %v581_v35  ;;  %v595_v38 = vpop.f32.mrf.mxu3  ;;  %v612_v42 = vadd.f32 %v1248_v36, %v567_v41  ;;  %v553_v43 = vpop.f32.mrf.mxu0 }
  0xe2   : > { %v1105_v40 = vmul.f32 -1.442695, %v595_v38  ;;  %v604_v44 = vadd.f32 %v1249_v39, %v553_v43 }
  0xe3   : > { %1250 = vpow2.f32 %v1103_v37  ;;  %614 = vst [vmem:[%s1662_s18] sm:$0xff] %v612_v42 }
  0xe4   : > { %1252 = vpow2.f32 %v1105_v40  ;;  %606 = vst [vmem:[%s1667_s10] sm:$0xff] %v604_v44 }
  0xe8   : > { %v583_v45 = vpop.f32.mrf.mxu2  ;;  %v569_v53 = vpop.f32.mrf.mxu1 }
  0xe9   : > { %v1251_v46 = vpop.eup %1250  ;;  %v1104_v47 = vmul.f32 -1.442695, %v583_v45  ;;  %v597_v48 = vpop.f32.mrf.mxu3  ;;  %v613_v55 = vadd.f32 %v1248_v36, %v569_v53 }
  0xea   : > { %v1253_v49 = vpop.eup %1252  ;;  %v1674_v50 = vadd.f32 1.0, %v1251_v46  ;;  %v1106_v51 = vmul.f32 -1.442695, %v597_v48  ;;  %v555_v54 = vpop.f32.mrf.mxu0 }
  0xeb   : > { %v1680_v52 = vadd.f32 1.0, %v1253_v49  ;;  %1254 = vpow2.f32 %v1104_v47  ;;  %v605_v56 = vadd.f32 %v1249_v39, %v555_v54  ;;  %615 = vst [vmem:[%s1662_s18 + $0x8] sm:$0xff] %v613_v55  ;;  %s1346_s18 = scalar_lea.hbm %s1860_s5, 32 }
  0xec   : > { %1256 = vrcp.f32 %v1674_v50  ;;  %p1348_p9 = scmp.lt.s32.totalorder %s1346_s18, %s1342_s22 }
  0xed   : > { %1258 = vrcp.f32 %v1680_v52  ;;  %607 = vst [vmem:[%s1667_s10 + $0x8] sm:$0xff] %v605_v56 }
  0xee   : > { %1260 = vpow2.f32 %v1106_v51  ;;  %p1349_p2 = por %p1348_p9, %p1347_p11 }
  0xf0   : > { %p1350_p10 = pnand %p1349_p2, %p1345_p8 }
  0xf1   : > { %v1255_v57 = vpop.eup %1254 }
  0xf2   : > { %v1693_v58 = vpop.eup %1256  ;;  %v1695_v59 = vadd.f32 1.0, %v1255_v57 }
  0xf3   : > { %1353 = shalt.err (!%p1350_p10)
}
  0xf4   : > { %s1495_s10 = smov 128   ;;  %s1496_s12 = smov 8   ;;  %v1711_v60 = vpop.eup %1258  ;;  %v625_v61 = vmul.f32 %v1693_v58, %v1674_v50 }
  0xf5   : > { %1175 = dma.vmem_to_hbm [thread:$0]  (%p1608_p7), %s1684_s11, 256, %s748_s14, %s1697_s19, %s1495_s10, %s1495_s10, %s1496_s12  }
  0xf6   : > { %s701_s13 = scalar_lea.sflag [#allocation4], %s1636_s23  ;;  %s1368_s22 = sshra.s32 %s1690_s17, 4  ;;  %s1369_s22 = int_to_ptr.hbm [resolvable:$true] %s1368_s22 }
  0xf7   : > { %s1370_s16 = scalar_lea.hbm %s1369_s22, 16  ;;  %s1374_s29 = scalar_lea.hbm %s1859_s4, 32 }
  0xf8   : > { %p1371_p12 = scmp.ne.s32.totalorder %s1369_s22, %s1370_s16  ;;  %p1375_p3 = scmp.lt.s32.totalorder %s1369_s22, %s1859_s4 }
  0xf9   : > { %p1376_p5 = scmp.lt.s32.totalorder %s1374_s29, %s1370_s16 }
  0xfa   : > { %p1372_p13 = pnand %p1371_p12, %p1608_p7 }
  0xfb   : > { %p1377_p1 = por %p1376_p5, %p1375_p3 }
  0xfc   : > { %p1373_p0 = pneg %p1372_p13 }
  0xfe   : > { %p1378_p4 = pnand %p1377_p1, %p1373_p0 }
 0x100   : > { %1381 = shalt.err (!%p1378_p4)
}
 0x101   : > { %1174 = dma.vmem_to_hbm [thread:$0]  (%p1608_p7), %s1687_s1, 256, %s1690_s17, %s701_s13, %s1495_s10, %s1495_s10, %s1496_s12   ;;  %v1261_v62 = vpop.eup %1260  ;;  %v667_v63 = vmul.f32 %v1711_v60, %v1680_v52  ;;  %1262 = vrcp.f32 %v1695_v59  ;;  %v626_v0 = vsub.f32 1.0, %v625_v61  ;;  %vm629_vm0 = vweird.f32 %v1674_v50 }
 0x102   : > { %v1732_v1 = vadd.f32 1.0, %v1261_v62  ;;  %s973_s0 = sshll.u32 %s1636_s23, 3  ;;  %v635_v6 = vand.u32 2147483648, %v1674_v50  ;;  %s1156_s11 = sshll.u32 %s1560_s28, 3  ;;  %vm630_vm1 = vweird.f32 %v1693_v58  ;;  %v633_v10 = vand.u32 2147483647, %v1674_v50 }
 0x103   : > { %v668_v2 = vsub.f32 1.0, %v667_v63  ;;  %v627_v3 = vmul.f32 %v1693_v58, %v626_v0  ;;  %vm671_vm2 = vweird.f32 %v1680_v52  ;;  %v675_v12 = vand.u32 2147483647, %v1680_v52  ;;  %s1754_s14 = scalar_lea.hbm %s1861_s6, %s1156_s11  ;;  %vm1758_vm4 = vmor %vm629_vm0, %vm630_vm1  ;;  %s1766_s17 = scalar_lea.vmem [#allocation10], %s973_s0 }
 0x104   : > { %1264 = vrcp.f32 %v1732_v1  ;;  %v650_v13 = vand.u32 2147483648, %v1695_v59  ;;  %v677_v15 = vand.u32 2147483648, %v1680_v52  ;;  %v648_v17 = vand.u32 2147483647, %v1695_v59  ;;  %s762_s10 = sshll.u32 %s1766_s17, 4  ;;  %s1777_s22 = scalar_lea.hbm %s1862_s7, %s1156_s11  ;;  %s1791_s10 = int_to_ptr.vmem [resolvable:$true] %s762_s10 }
 0x105   : > { %v669_v7 = vmul.f32 %v1711_v60, %v668_v2  ;;  %v628_v9 = vadd.f32 %v1693_v58, %v627_v3  ;;  %v636_v19 = vor.u32 1.1754944e-38, %v635_v6  ;;  %vm672_vm5 = vweird.f32 %v1711_v60  ;;  %s764_s16 = sshll.u32 %s1754_s14, 4  ;;  %s1798_s9 = scalar_lea.vmem [#allocation11], %s973_s0  ;;  %s765_s16 = int_to_ptr.hbm [resolvable:$true] %s764_s16 }
 0x106   : > { %vm644_vm6 = vweird.f32 %v1695_v59  ;;  %v692_v24 = vand.u32 2147483648, %v1732_v1  ;;  %v651_v25 = vor.u32 1.1754944e-38, %v650_v13  ;;  %v690_v27 = vand.u32 2147483647, %v1732_v1  ;;  %vm1786_vm10 = vmor %vm671_vm2, %vm672_vm5  ;;  %s779_s18 = sshll.u32 %s1798_s9, 4  ;;  %s781_s29 = sshll.u32 %s1777_s22, 4  ;;  %s1804_s18 = int_to_ptr.vmem [resolvable:$true] %s779_s18  ;;  %s1806_s29 = int_to_ptr.hbm [resolvable:$true] %s781_s29 }
 0x107   : > { %v1263_v4 = vpop.eup %1262  ;;  %v670_v20 = vadd.f32 %v1711_v60, %v669_v7  ;;  %v632_v22 = vsel %vm1758_vm4, %v1693_v58, %v628_v9  ;;  %vm634_vm9 = vcmp.eq.f32.partialorder %v633_v10, 8.507059e+37  ;;  %vm649_vm11 = vcmp.eq.f32.partialorder %v648_v17, 8.507059e+37  ;;  %s1396_s30 = sshra.s32 %s765_s16, 4  ;;  %s1402_s1 = scalar_lea.hbm %s1861_s6, 16  ;;  %s1397_s30 = int_to_ptr.hbm [resolvable:$true] %s1396_s30 }
 0x108   : > { %v640_v5 = vmul.f32 %v1263_v4, %v1695_v59  ;;  %vm645_vm3 = vweird.f32 %v1263_v4  ;;  %vm686_vm12 = vweird.f32 %v1732_v1  ;;  %v637_v30 = vsel %vm634_vm9, %v636_v19, %v632_v22  ;;  %s1398_s0 = scalar_lea.hbm %s1397_s30, 8  ;;  %p1403_p2 = scmp.lt.s32.totalorder %s1397_s30, %s1861_s6 }
 0x109   : > { %vm646_vm7 = vmor %vm644_vm6, %vm645_vm3  ;;  %v674_v31 = vsel %vm1786_vm10, %v1711_v60, %v670_v20  ;;  %v678_v34 = vor.u32 1.1754944e-38, %v677_v15  ;;  %v693_v36 = vor.u32 1.1754944e-38, %v692_v24  ;;  %vm676_vm14 = vcmp.eq.f32.partialorder %v675_v12, 8.507059e+37  ;;  %p1399_p8 = scmp.ne.s32.totalorder %s1397_s30, %s1398_s0  ;;  %p1404_p10 = scmp.lt.s32.totalorder %s1402_s1, %s1398_s0 }
 0x10a   : > { %v1265_v8 = vpop.eup %1264  ;;  %v641_v11 = vsub.f32 1.0, %v640_v5  ;;  %vm691_vm15 = vcmp.eq.f32.partialorder %v690_v27, 8.507059e+37 }
 0x10b   : > { %v682_v14 = vmul.f32 %v1265_v8, %v1732_v1  ;;  %vm687_vm8 = vweird.f32 %v1265_v8  ;;  %v679_v38 = vsel %vm676_vm14, %v678_v34, %v674_v31  ;;  %p1400_p11 = pnand %p1399_p8, %p1608_p7  ;;  %p1405_p12 = por %p1404_p10, %p1403_p2 }
 0x10c   : > { %v642_v16 = vmul.f32 %v1263_v4, %v641_v11  ;;  %vm688_vm13 = vmor %vm686_vm12, %vm687_vm8 }
 0x10d   : > { %v683_v21 = vsub.f32 1.0, %v682_v14  ;;  %p1401_p9 = pneg %p1400_p11 }
 0x10e   : > { %v643_v23 = vadd.f32 %v1263_v4, %v642_v16 }
 0x10f   : > { %v684_v26 = vmul.f32 %v1265_v8, %v683_v21  ;;  %p1406_p13 = pnand %p1405_p12, %p1401_p9 }
 0x110   : > { %v647_v29 = vsel %vm646_vm7, %v1263_v4, %v643_v23 }
 0x111   : > { %v652_v32 = vsel %vm649_vm11, %v651_v25, %v647_v29  ;;  %v685_v33 = vadd.f32 %v1265_v8, %v684_v26 }
 0x112   : > { %v1161_v35 = vpack.c.bf16 %v652_v32, %v637_v30 }
 0x113   : > { %v689_v37 = vsel %vm688_vm13, %v1265_v8, %v685_v33 }
 0x114   : > { %1162 = vst [vmem:[%s1766_s17] sm:$0xff] %v1161_v35   ;;  %v694_v39 = vsel %vm691_vm15, %v693_v36, %v689_v37 }
 0x115   : > { %1409 = shalt.err (!%p1406_p13)
}
 0x116   : > { %s1497_s17 = smov 64   ;;  %s1498_s13 = smov 4   ;;  %v1166_v40 = vpack.c.bf16 %v694_v39, %v679_v38 }
 0x117   : > { %1176 = dma.vmem_to_hbm [thread:$0]  (%p1608_p7), %s1791_s10, 128, %s765_s16, %s1697_s19, %s1497_s17, %s1497_s17, %s1498_s13  }
 0x118   : > { %1167 = vst [vmem:[%s1798_s9] sm:$0xff] %v1166_v40   ;;  %s716_s22 = scalar_lea.sflag [#allocation12], %s1636_s23  ;;  %s1424_s11 = sshra.s32 %s1806_s29, 4  ;;  %s1425_s11 = int_to_ptr.hbm [resolvable:$true] %s1424_s11 }
 0x119   : > { %s1426_s30 = scalar_lea.hbm %s1425_s11, 8  ;;  %s1430_s1 = scalar_lea.hbm %s1862_s7, 16 }
 0x11a   : > { %p1427_p0 = scmp.ne.s32.totalorder %s1425_s11, %s1426_s30  ;;  %p1431_p1 = scmp.lt.s32.totalorder %s1425_s11, %s1862_s7 }
 0x11b   : > { %p1432_p4 = scmp.lt.s32.totalorder %s1430_s1, %s1426_s30 }
 0x11c   : > { %p1428_p3 = pnand %p1427_p0, %p1608_p7 }
 0x11d   : > { %p1433_p8 = por %p1432_p4, %p1431_p1 }
 0x11e   : > { %p1429_p5 = pneg %p1428_p3 }
 0x120   : > { %p1434_p11 = pnand %p1433_p8, %p1429_p5 }
 0x122   : > { %1437 = shalt.err (!%p1434_p11)
}
 0x123   : > { %1177 = dma.vmem_to_hbm [thread:$0]  (%p1608_p7), %s1804_s18, 128, %s1806_s29, %s716_s22, %s1497_s17, %s1497_s17, %s1498_s13  }
 0x124 PF: > { %s796_s23 = sand.u32 1, %s1476_s24   ;;  %p1877_p9 = scmp.ge.s32.totalorder %s1488_s27, 2 }
 0x125   : > { %s797_s19 = scalar_lea.sflag [#allocation4], %s796_s23 }
 0x126   : > { %p1191_p2 = pnand %p1877_p9, %p1576_p6 }
 0x128   : > { %p1192_p10 = pneg %p1191_p2 }
 0x12a   : > { %1463 = dma.done.wait (%p1192_p10), %s797_s19, 256  }
 0x12b   : > { %1465 = vsyncadd (%p1192_p10), %s797_s19, 4294967040  ;;  %s1878_s10 = sadd.s32 4294967294, %s1488_s27  }
 0x12c   : > { %s806_s16 = sand.u32 1, %s1878_s10  }
 0x12d   : > { %s807_s9 = scalar_lea.sflag [#allocation9], %s806_s16 }
 0x12e   : > { %1467 = dma.done.wait (%p1192_p10), %s807_s9, 384  }
 0x12f   : > { %1469 = vsyncadd (%p1192_p10), %s807_s9, 4294966912  ;;  %s827_s21 = scalar_lea.sflag [#allocation12], %s796_s23 }
 0x130   : > { %1471 = dma.done.wait (%p1192_p10), %s827_s21, 128  }
 0x131   : > { %1473 = vsyncadd (%p1192_p10), %s827_s21, 4294967168  ;;  %p28_p7 = scmp.ge.s32.totalorder %s1594_s15, 4   ;;  %s1879_s24 = smov %s1480_s25 }
 0x132   : > { %s1880_s25 = smov %s1484_s26  ;;  %s1881_s26 = smov %s1604_s20 }
 0x133   : > { %s1882_s27 = smov %s1594_s15  ;;  %30 = sbr.rel (!%p28_p7) target bundleno = 13 (0xd), region = 134 }
 0x138   :  { %833 = vsyncpa [#allocation3], 1 }
 0x139   :  { %835 = vsyncpa [#allocation3 + $0x1], 1 }
 0x13a   :  { %836 = vsyncpa [#allocation6], 1 }
 0x13b   :  { %837 = vsyncpa [#allocation4], 1 }
 0x13c   :  { %839 = vsyncpa [#allocation4 + $0x1], 1 }
 0x13d   :  { %840 = vsyncpa [#allocation9], 1 }
 0x13e   :  { %842 = vsyncpa [#allocation9 + $0x1], 1 }
 0x13f   :  { %843 = vsyncpa [#allocation12], 1 }
 0x140   :  { %845 = vsyncpa [#allocation12 + $0x1], 1 }

</bundles_post_ra>
